<compile_context>
chip_gen: v7x
topology: tpu7x:2x2x1
jax: 0.10.0
libtpu: 0.0.40
codegen_flags: <defaults>
</compile_context>

<pallas_src>
import jax
import jax.numpy as jnp
from jax.experimental import pallas as pl
from jax.experimental.pallas import tpu as pltpu

_LANE = 128
_SUB = 8


def _round_up(x, m):
    return ((x + m - 1) // m) * m


def _tpu_vmem_and_cores():
    """Best-effort (VMEM capacity bytes, TensorCores per chip)."""
    cap = 128 * 1024 * 1024
    cores = 0
    try:
        info = pltpu.get_tpu_info()
        cap = int(getattr(info, "vmem_capacity_bytes", cap))
        cores = int(getattr(info, "num_cores", 0) or
                    getattr(info, "tensorcores_per_chip", 0) or 0)
    except Exception:
        pass
    if cores <= 0:
        # v7x heuristic: 64 MiB VMEM per TC, 2 TCs per chip; v5e/v6e: 128 MiB, 1 TC.
        cores = 2 if cap <= 96 * 1024 * 1024 else 1
    return cap, cores


def _row_vmem_bytes(ni, na, H, in_itemsize, cd_itemsize):
    """Approx VMEM bytes per batch row of one grid step (excluding weights).

    Narrow input tiles are lane-padded to 128 lanes in VMEM (8x/32x logical size
    for 16/4 features), and the inputs + output are double-buffered."""
    ni_p = _round_up(ni, _LANE)
    na_p = _round_up(na, _LANE)
    h_p = _round_up(H, _LANE)
    inputs = 2 * (ni_p + na_p) * in_itemsize          # double-buffered state/action
    output = 2 * _LANE * 4                             # double-buffered (tb,1) f32 (lane-padded)
    inter = h_p * (4 + 4 + cd_itemsize) + _LANE * 4    # f32 h (2 live) + cast + (tb,128) q
    return inputs + output + inter


def _pick_batch_tile(B, row_vmem, row_hbm, *, vmem_budget, num_cores,
                     max_tile=16384, target_step_bytes=1 << 20):
    """Largest lane-aligned batch tile that fits the VMEM budget, preferring
    >= 2 pipelined steps per TensorCore on megacore parts when each step still
    streams a healthy HBM chunk."""
    if B <= _LANE:
        return _round_up(max(B, _SUB), _SUB)
    vmem_rows = max(_LANE, (vmem_budget // max(row_vmem, 1)) // _LANE * _LANE)
    tb = min(max_tile, vmem_rows, _round_up(B, _LANE))
    if num_cores > 1:
        min_steps = 2 * num_cores
        tb_split = _round_up(pl.cdiv(_round_up(B, _LANE), min_steps), _LANE)
        if tb_split * row_hbm >= target_step_bytes // 4:
            tb = min(tb, tb_split)
    return max(_LANE, (tb // _LANE) * _LANE)


def _qnet_kernel(s_ref, a_ref, w1s_ref, w1a_ref, b1_ref, w2_ref, b2_ref,
                 w3_ref, b3_ref, o_ref):
    wdt = w1s_ref.dtype  # MXU operand dtype (bf16 by default)

    # Layer 1: concat([state, action]) @ W1 fused as a sum of two MXU dots
    # (the concat never materializes in HBM or VMEM).
    s = s_ref[...].astype(wdt)
    a = a_ref[...].astype(wdt)
    h = jnp.dot(s, w1s_ref[...], preferred_element_type=jnp.float32)
    h = h + jnp.dot(a, w1a_ref[...], preferred_element_type=jnp.float32)
    h = jnp.maximum(h + b1_ref[...], 0.0)             # bias + ReLU in f32

    # Layer 2.
    h = jnp.dot(h.astype(wdt), w2_ref[...], preferred_element_type=jnp.float32)
    h = jnp.maximum(h + b2_ref[...], 0.0)

    # Layer 3 (H -> 1): plain (tb,H) @ (H,128) matmul against a lane-padded
    # weight column (column 0 real, columns 1..127 zero) -> no transposed
    # contraction / XLU transpose of the big activation.  Output store is tiny.
    q = jnp.dot(h.astype(wdt), w3_ref[...], preferred_element_type=jnp.float32)
    o_ref[...] = (q[:, 0:1] + b3_ref[...]).astype(o_ref.dtype)


def qnetwork_forward(state, action, params, *, batch_tile=None,
                     compute_dtype=jnp.bfloat16):
    """Pallas implementation of QNetwork.forward(state, action).

    params = (w1, b1, w2, b2, w3, b3); weights stored (in_features, out_features),
    biases (1, out_features).  state/action may be f32 or bf16 (bf16 recommended
    for production — halves input HBM traffic; the kernel casts at the dot)."""
    B, ni = state.shape
    Ba, na = action.shape
    assert Ba == B, "state/action batch mismatch"
    w1, b1, w2, b2, w3, b3 = params
    F, H = w1.shape
    assert F == ni + na, "w1 must have num_inputs + num_actions input rows"
    assert w2.shape == (H, H), "w2 must be (hidden, hidden)"
    assert w3.shape == (H, 1), "w3 must be stored (in_features=H, out_features=1)"

    cd = jnp.dtype(compute_dtype)
    # Split W1 by input rows (fused concat); ship MXU operands in the compute
    # dtype, keep biases f32.
    w1s = w1[:ni].astype(cd)                                   # (ni, H)
    w1a = w1[ni:].astype(cd)                                   # (na, H)
    w2c = w2.astype(cd)                                        # (H, H)
    w3p = jnp.pad(w3, ((0, 0), (0, _LANE - 1))).astype(cd)     # (H, 128), col 0 real
    b1f = b1.reshape(1, H).astype(jnp.float32)
    b2f = b2.reshape(1, H).astype(jnp.float32)
    b3f = b3.reshape(1, 1).astype(jnp.float32)
    weights = (w1s, w1a, b1f, w2c, b2f, w3p, b3f)
    weight_vmem = sum(int(x.size) * x.dtype.itemsize for x in weights)

    in_itemsize = max(state.dtype.itemsize, action.dtype.itemsize)
    row_hbm = ni * state.dtype.itemsize + na * action.dtype.itemsize + 4
    row_vmem = _row_vmem_bytes(ni, na, H, in_itemsize, cd.itemsize)

    vmem_cap, num_cores = _tpu_vmem_and_cores()
    if batch_tile is None:
        tb = _pick_batch_tile(B, row_vmem, row_hbm,
                              vmem_budget=vmem_cap // 2, num_cores=num_cores)
    else:
        tb = int(batch_tile)
        assert tb >= _SUB and tb % _SUB == 0, "batch_tile must be a multiple of 8"

    # Ragged batches: pad up to a multiple of the tile (padded rows compute
    # garbage q-values that are sliced away below).
    B_pad = _round_up(B, tb)
    if B_pad != B:
        state = jnp.pad(state, ((0, B_pad - B), (0, 0)))
        action = jnp.pad(action, ((0, B_pad - B), (0, 0)))
    grid = (B_pad // tb,)

    # Scoped-VMEM limit sized from the actual tile footprint (+ slack).
    needed = tb * row_vmem + weight_vmem + (4 << 20)
    vmem_limit = int(min(max(needed, 32 << 20), vmem_cap * 9 // 10))

    def bcast(arr):
        # Constant-index blocks are resident across the grid; single-buffer them
        # so the (potentially large) weights don't pay double-buffer VMEM.
        return pl.BlockSpec(arr.shape, lambda i: (0, 0),
                            pipeline_mode=pl.Buffered(1))

    flops = int(2 * B_pad * (F * H + H * H + H))
    bytes_accessed = int(B_pad * row_hbm + weight_vmem)

    out = pl.pallas_call(
        _qnet_kernel,
        out_shape=jax.ShapeDtypeStruct((B_pad, 1), jnp.float32),
        grid_spec=pltpu.PrefetchScalarGridSpec(
            num_scalar_prefetch=0,
            grid=grid,
            in_specs=[
                pl.BlockSpec((tb, ni), lambda i: (i, 0)),   # state tile
                pl.BlockSpec((tb, na), lambda i: (i, 0)),   # action tile
                bcast(w1s), bcast(w1a), bcast(b1f),
                bcast(w2c), bcast(b2f),
                bcast(w3p), bcast(b3f),
            ],
            out_specs=pl.BlockSpec((tb, 1), lambda i: (i, 0)),
        ),
        compiler_params=pltpu.CompilerParams(
            dimension_semantics=("parallel",),
            vmem_limit_bytes=vmem_limit,
        ),
        cost_estimate=pl.CostEstimate(
            flops=flops, transcendentals=0, bytes_accessed=bytes_accessed),
    )(state, action, *weights)
    return out[:B]


def init_qnetwork_params(key, num_inputs, num_actions, hidden_size, num_layers=2):
    """Deterministic init matching the PyTorch module's layer shapes.

    PyTorch nn.Linear default: U(-1/sqrt(fan_in), 1/sqrt(fan_in)).
    Weights stored as (in_features, out_features)."""
    dims = [num_inputs + num_actions] + [hidden_size] * num_layers + [1]
    params = []
    for i in range(len(dims) - 1):
        fan_in, fan_out = dims[i], dims[i + 1]
        key, kw, kb = jax.random.split(key, 3)
        bound = 1.0 / jnp.sqrt(fan_in)
        w = jax.random.uniform(kw, (fan_in, fan_out), jnp.float32, -bound, bound)
        b = jax.random.uniform(kb, (1, fan_out), jnp.float32, -bound, bound)
        params.extend([w, b])
    return tuple(params)


def qnetwork_reference(state, action, params, *, compute_dtype=jnp.bfloat16):
    """Pure-JAX reference with matching matmul precision (narrow operands,
    f32 accumulation) for correctness checking."""
    w1, b1, w2, b2, w3, b3 = params
    cd = jnp.dtype(compute_dtype)
    x = jnp.concatenate([state, action], axis=1).astype(cd)
    h = jnp.dot(x, w1.astype(cd), preferred_element_type=jnp.float32)
    h = jnp.maximum(h + b1, 0.0)
    h = jnp.dot(h.astype(cd), w2.astype(cd), preferred_element_type=jnp.float32)
    h = jnp.maximum(h + b2, 0.0)
    q = jnp.dot(h.astype(cd), w3.astype(cd), preferred_element_type=jnp.float32)
    return q + b3


if __name__ == "__main__":
    num_inputs, num_actions, hidden_size, num_layers = 16, 4, 32, 2

    key = jax.random.PRNGKey(0)
    kp, ks, ka, ks2, ka2 = jax.random.split(key, 5)
    params = init_qnetwork_params(kp, num_inputs, num_actions, hidden_size, num_layers)

    # 1) Small f32 batch (module-default style).
    batch = 8
    state = jax.random.normal(ks, (batch, num_inputs), jnp.float32)
    action = jax.random.normal(ka, (batch, num_actions), jnp.float32)
    q = jax.block_until_ready(qnetwork_forward(state, action, params))
    q_ref = qnetwork_reference(state, action, params)
    assert q.shape == (batch, 1)
    assert jnp.allclose(q, q_ref, atol=1e-3, rtol=1e-3), "mismatch vs reference (B=8)"

    # 2) Ragged batch in bf16 (recommended production input dtype) — exercises
    #    the wrapper-side padding + tiled path.
    batch2 = 200
    state2 = jax.random.normal(ks2, (batch2, num_inputs), jnp.float32).astype(jnp.bfloat16)
    action2 = jax.random.normal(ka2, (batch2, num_actions), jnp.float32).astype(jnp.bfloat16)
    q2 = jax.block_until_ready(qnetwork_forward(state2, action2, params))
    q2_ref = qnetwork_reference(state2, action2, params)
    assert q2.shape == (batch2, 1)
    assert jnp.allclose(q2, q2_ref, atol=1e-3, rtol=1e-3), "mismatch vs reference (B=200)"

    print("KERNEL_OK")
</pallas_src>

<mosaic_0001>
module attributes {stable_mosaic.version = 11 : i64} {
  func.func @_qnet_kernel(%arg0: i32, %arg1: memref<8x16xf32, #tpu.memory_space<vmem>>, %arg2: memref<8x4xf32, #tpu.memory_space<vmem>>, %arg3: memref<16x32xbf16, #tpu.memory_space<vmem>>, %arg4: memref<4x32xbf16, #tpu.memory_space<vmem>>, %arg5: memref<1x32xf32, #tpu.memory_space<vmem>>, %arg6: memref<32x32xbf16, #tpu.memory_space<vmem>>, %arg7: memref<1x32xf32, #tpu.memory_space<vmem>>, %arg8: memref<32x128xbf16, #tpu.memory_space<vmem>>, %arg9: memref<1x1xf32, #tpu.memory_space<vmem>>, %arg10: memref<8x1xf32, #tpu.memory_space<vmem>>) attributes {dimension_semantics = [#tpu.dimension_semantics<parallel>], iteration_bounds = array<i64: 1>, scalar_prefetch = 0 : i64, scratch_operands = 0 : i64, tpu.core_type = #tpu.core_type<tc>, window_params = [{transform_indices = @transform_0, window_bounds = array<i64: 8, 16>}, {transform_indices = @transform_1, window_bounds = array<i64: 8, 4>}, {pipeline_mode = #tpu.pipeline_mode<synchronous>, transform_indices = @transform_2, window_bounds = array<i64: 16, 32>}, {pipeline_mode = #tpu.pipeline_mode<synchronous>, transform_indices = @transform_3, window_bounds = array<i64: 4, 32>}, {pipeline_mode = #tpu.pipeline_mode<synchronous>, transform_indices = @transform_4, window_bounds = array<i64: 1, 32>}, {pipeline_mode = #tpu.pipeline_mode<synchronous>, transform_indices = @transform_5, window_bounds = array<i64: 32, 32>}, {pipeline_mode = #tpu.pipeline_mode<synchronous>, transform_indices = @transform_6, window_bounds = array<i64: 1, 32>}, {pipeline_mode = #tpu.pipeline_mode<synchronous>, transform_indices = @transform_7, window_bounds = array<i64: 32, 128>}, {pipeline_mode = #tpu.pipeline_mode<synchronous>, transform_indices = @transform_8, window_bounds = array<i64: 1, 1>}, {transform_indices = @transform_9, window_bounds = array<i64: 8, 1>}]} {
    %c0 = arith.constant 0 : index
    %c0_0 = arith.constant 0 : index
    %0 = vector.load %arg1[%c0, %c0_0] : memref<8x16xf32, #tpu.memory_space<vmem>>, vector<8x16xf32>
    %1 = arith.truncf %0 : vector<8x16xf32> to vector<8x16xbf16>
    %c0_1 = arith.constant 0 : index
    %c0_2 = arith.constant 0 : index
    %2 = vector.load %arg2[%c0_1, %c0_2] : memref<8x4xf32, #tpu.memory_space<vmem>>, vector<8x4xf32>
    %3 = arith.truncf %2 : vector<8x4xf32> to vector<8x4xbf16>
    %c0_3 = arith.constant 0 : index
    %c0_4 = arith.constant 0 : index
    %4 = vector.load %arg3[%c0_3, %c0_4] : memref<16x32xbf16, #tpu.memory_space<vmem>>, vector<16x32xbf16>
    %cst = arith.constant dense<0.000000e+00> : vector<8x32xf32>
    %5 = tpu.matmul %1, %4, %cst {dimension_numbers = #tpu.dot_dimension_numbers<[1], [0], [0], [1], [0, 0, 1, 1], [], []>} : vector<8x16xbf16>, vector<16x32xbf16>, vector<8x32xf32> -> vector<8x32xf32>
    %c0_5 = arith.constant 0 : index
    %c0_6 = arith.constant 0 : index
    %6 = vector.load %arg4[%c0_5, %c0_6] : memref<4x32xbf16, #tpu.memory_space<vmem>>, vector<4x32xbf16>
    %cst_7 = arith.constant dense<0.000000e+00> : vector<8x32xf32>
    %7 = tpu.matmul %3, %6, %cst_7 {dimension_numbers = #tpu.dot_dimension_numbers<[1], [0], [0], [1], [0, 0, 1, 1], [], []>} : vector<8x4xbf16>, vector<4x32xbf16>, vector<8x32xf32> -> vector<8x32xf32>
    %8 = arith.addf %5, %7 : vector<8x32xf32>
    %c0_8 = arith.constant 0 : index
    %c0_9 = arith.constant 0 : index
    %9 = vector.load %arg5[%c0_8, %c0_9] : memref<1x32xf32, #tpu.memory_space<vmem>>, vector<1x32xf32>
    %10 = vector.broadcast %9 : vector<1x32xf32> to vector<8x32xf32>
    %11 = arith.addf %8, %10 : vector<8x32xf32>
    %cst_10 = arith.constant 0.000000e+00 : f32
    %12 = vector.broadcast %cst_10 : f32 to vector<8x32xf32>
    %13 = arith.maximumf %11, %12 : vector<8x32xf32>
    %14 = arith.truncf %13 : vector<8x32xf32> to vector<8x32xbf16>
    %c0_11 = arith.constant 0 : index
    %c0_12 = arith.constant 0 : index
    %15 = vector.load %arg6[%c0_11, %c0_12] : memref<32x32xbf16, #tpu.memory_space<vmem>>, vector<32x32xbf16>
    %cst_13 = arith.constant dense<0.000000e+00> : vector<8x32xf32>
    %16 = tpu.matmul %14, %15, %cst_13 {dimension_numbers = #tpu.dot_dimension_numbers<[1], [0], [0], [1], [0, 0, 1, 1], [], []>} : vector<8x32xbf16>, vector<32x32xbf16>, vector<8x32xf32> -> vector<8x32xf32>
    %c0_14 = arith.constant 0 : index
    %c0_15 = arith.constant 0 : index
    %17 = vector.load %arg7[%c0_14, %c0_15] : memref<1x32xf32, #tpu.memory_space<vmem>>, vector<1x32xf32>
    %18 = vector.broadcast %17 : vector<1x32xf32> to vector<8x32xf32>
    %19 = arith.addf %16, %18 : vector<8x32xf32>
    %cst_16 = arith.constant 0.000000e+00 : f32
    %20 = vector.broadcast %cst_16 : f32 to vector<8x32xf32>
    %21 = arith.maximumf %19, %20 : vector<8x32xf32>
    %22 = arith.truncf %21 : vector<8x32xf32> to vector<8x32xbf16>
    %c0_17 = arith.constant 0 : index
    %c0_18 = arith.constant 0 : index
    %23 = vector.load %arg8[%c0_17, %c0_18] : memref<32x128xbf16, #tpu.memory_space<vmem>>, vector<32x128xbf16>
    %cst_19 = arith.constant dense<0.000000e+00> : vector<8x128xf32>
    %24 = tpu.matmul %22, %23, %cst_19 {dimension_numbers = #tpu.dot_dimension_numbers<[1], [0], [0], [1], [0, 0, 1, 1], [], []>} : vector<8x32xbf16>, vector<32x128xbf16>, vector<8x128xf32> -> vector<8x128xf32>
    %25 = vector.extract_strided_slice %24 {offsets = [0, 0], sizes = [8, 1], strides = [1, 1]} : vector<8x128xf32> to vector<8x1xf32>
    %c0_20 = arith.constant 0 : index
    %c0_21 = arith.constant 0 : index
    %26 = vector.load %arg9[%c0_20, %c0_21] : memref<1x1xf32, #tpu.memory_space<vmem>>, vector<1x1xf32>
    %27 = vector.broadcast %26 : vector<1x1xf32> to vector<8x1xf32>
    %28 = arith.addf %25, %27 : vector<8x1xf32>
    %c0_22 = arith.constant 0 : index
    %c0_23 = arith.constant 0 : index
    %29 = vector.load %arg10[%c0_22, %c0_23] : memref<8x1xf32, #tpu.memory_space<vmem>>, vector<8x1xf32>
    tpu.vector_store %arg10[%c0_22, %c0_23], %28 {strides = array<i32>} : memref<8x1xf32, #tpu.memory_space<vmem>>, vector<8x1xf32>,
    return
  }
  func.func @transform_0(%arg0: i32) -> (i32, i32) {
    %c0_i32 = arith.constant 0 : i32
    %c0_i32_0 = arith.constant 0 : i32
    return %arg0, %c0_i32 : i32, i32
  }
  func.func @transform_1(%arg0: i32) -> (i32, i32) {
    %c0_i32 = arith.constant 0 : i32
    %c0_i32_0 = arith.constant 0 : i32
    return %arg0, %c0_i32 : i32, i32
  }
  func.func @transform_2(%arg0: i32) -> (i32, i32) {
    %c0_i32 = arith.constant 0 : i32
    %c0_i32_0 = arith.constant 0 : i32
    %c0_i32_1 = arith.constant 0 : i32
    return %c0_i32, %c0_i32_0 : i32, i32
  }
  func.func @transform_3(%arg0: i32) -> (i32, i32) {
    %c0_i32 = arith.constant 0 : i32
    %c0_i32_0 = arith.constant 0 : i32
    %c0_i32_1 = arith.constant 0 : i32
    return %c0_i32, %c0_i32_0 : i32, i32
  }
  func.func @transform_4(%arg0: i32) -> (i32, i32) {
    %c0_i32 = arith.constant 0 : i32
    %c0_i32_0 = arith.constant 0 : i32
    %c0_i32_1 = arith.constant 0 : i32
    return %c0_i32, %c0_i32_0 : i32, i32
  }
  func.func @transform_5(%arg0: i32) -> (i32, i32) {
    %c0_i32 = arith.constant 0 : i32
    %c0_i32_0 = arith.constant 0 : i32
    %c0_i32_1 = arith.constant 0 : i32
    return %c0_i32, %c0_i32_0 : i32, i32
  }
  func.func @transform_6(%arg0: i32) -> (i32, i32) {
    %c0_i32 = arith.constant 0 : i32
    %c0_i32_0 = arith.constant 0 : i32
    %c0_i32_1 = arith.constant 0 : i32
    return %c0_i32, %c0_i32_0 : i32, i32
  }
  func.func @transform_7(%arg0: i32) -> (i32, i32) {
    %c0_i32 = arith.constant 0 : i32
    %c0_i32_0 = arith.constant 0 : i32
    %c0_i32_1 = arith.constant 0 : i32
    return %c0_i32, %c0_i32_0 : i32, i32
  }
  func.func @transform_8(%arg0: i32) -> (i32, i32) {
    %c0_i32 = arith.constant 0 : i32
    %c0_i32_0 = arith.constant 0 : i32
    %c0_i32_1 = arith.constant 0 : i32
    return %c0_i32, %c0_i32_0 : i32, i32
  }
  func.func @transform_9(%arg0: i32) -> (i32, i32) {
    %c0_i32 = arith.constant 0 : i32
    %c0_i32_0 = arith.constant 0 : i32
    return %arg0, %c0_i32 : i32, i32
  }
}

</mosaic_0001>

<bundles_post_ra>
// kernel: tpu_custom_call.1
= control target key start
LH: loop header
LB: loop body
LE: loop exit
PB: predicated region body
PF: predicated region fallthrough
CT: control target
= control target key end

     0   :  { %s587_s0 = inlined_call_operand.hbm [shape: f32[8,16], index: 0, kind: input, shape index: {}]   ;;  %s588_s1 = inlined_call_operand.vmem [shape: f32[8,4], index: 1, kind: input, shape index: {}]   ;;  %s589_s2 = inlined_call_operand.hbm [shape: bf16[16,32], index: 2, kind: input, shape index: {}]   ;;  %s590_s3 = inlined_call_operand.vmem [shape: bf16[4,32], index: 3, kind: input, shape index: {}]   ;;  %s591_s4 = inlined_call_operand.hbm [shape: f32[1,32], index: 4, kind: input, shape index: {}]   ;;  %s592_s5 = inlined_call_operand.vmem [shape: bf16[32,32], index: 5, kind: input, shape index: {}]   ;;  %s593_s6 = inlined_call_operand.vmem [shape: f32[1,32], index: 6, kind: input, shape index: {}]   ;;  %s594_s7 = inlined_call_operand.vmem [shape: bf16[32,128], index: 7, kind: input, shape index: {}]   ;;  %s595_s8 = inlined_call_operand.<no memory space> [shape: f32[1,1], index: 8, kind: input, shape index: {}]   ;;  %s596_s9 = inlined_call_operand.vmem [shape: f32[8,1], index: 9, kind: output, shape index: {}]  }
   0x1   :  { %v14_v0 = vstv %s595_s8 }
   0x2   :  { %15 = vst [vmem:[#allocation2] sm:$0x1] %v14_v0 }
   0x3   :  { %16 = vsyncpa [#allocation4], 0 }
   0x4   :  { %17 = vsyncpa [#allocation6], 0  ;;  %s463_s11 = smov [#allocation5]   ;;  %s393_s15 = scalar_lea.hbm %s589_s2, 128 }
   0x5   :  { %s35_s12 = sshll.u32 %s463_s11, 4  ;;  %p394_p0 = scmp.ne.s32.totalorder %s589_s2, %s393_s15  ;;  %s36_s12 = int_to_ptr.vmem [resolvable:$true] %s35_s12 }
   0x6   :  { %p397_p1 = scmp.lt.u32.totalorder %s393_s15, %s589_s2 }
   0x8   :  { %p399_p2 = pnand %p397_p1, %p394_p0 }
   0xa   :  { %402 = shalt.err (!%p399_p2)
}
   0xb   :  { %s403_s8 = scalar_lea.vmem %s36_s12, 128  ;;  %p408_p4 = scmp.lt.s32.totalorder %s36_s12, %s36_s12 }
   0xc   :  { %p404_p3 = scmp.ne.s32.totalorder %s36_s12, %s403_s8  ;;  %p409_p5 = scmp.lt.s32.totalorder %s403_s8, %s403_s8 }
   0xe   :  { %p410_p6 = por %p409_p5, %p408_p4 }
  0x10   :  { %p411_p7 = pnand %p410_p6, %p404_p3 }
  0x12   :  { %414 = shalt.err (!%p411_p7)
}
  0x13   :  { %s464_s20 = smov 64   ;;  %s465_s21 = smov 4  }
  0x14   :  { %41 = dma.hbm_to_vmem [thread:$0]  %s589_s2, 128, %s36_s12, [#allocation6], %s464_s20, %s464_s20, %s465_s21  }
  0x15   :  { %s466_s24 = smov [#allocation3]   ;;  %s467_s26 = smov [#allocation7]  }
  0x16   :  { %s24_s25 = sshll.u32 %s466_s24, 4  ;;  %s50_s27 = sshll.u32 %s467_s26, 4  ;;  %s25_s25 = int_to_ptr.vmem [resolvable:$true] %s24_s25  ;;  %s51_s27 = int_to_ptr.vmem [resolvable:$true] %s50_s27 }
  0x17   :  { %s415_s30 = scalar_lea.hbm %s587_s0, 128 }
  0x18   :  { %p416_p8 = scmp.ne.s32.totalorder %s587_s0, %s415_s30  ;;  %p419_p9 = scmp.lt.u32.totalorder %s415_s30, %s587_s0 }
  0x1a   :  { %p421_p10 = pnand %p419_p9, %p416_p8 }
  0x1c   :  { %424 = shalt.err (!%p421_p10)
}
  0x1d   :  { %s425_s2 = scalar_lea.vmem %s25_s25, 128  ;;  %p430_p12 = scmp.lt.s32.totalorder %s25_s25, %s25_s25 }
  0x1e   :  { %p426_p11 = scmp.ne.s32.totalorder %s25_s25, %s425_s2  ;;  %p431_p13 = scmp.lt.s32.totalorder %s425_s2, %s425_s2 }
  0x20   :  { %p432_p0 = por %p431_p13, %p430_p12 }
  0x22   :  { %p433_p1 = pnand %p432_p0, %p426_p11 }
  0x24   :  { %436 = shalt.err (!%p433_p1)
}
  0x25   :  { %27 = dma.hbm_to_vmem [thread:$0]  %s587_s0, 128, %s25_s25, [#allocation4]  }
  0x26   :  { %s437_s18 = scalar_lea.hbm %s591_s4, 16 }
  0x27   :  { %p438_p2 = scmp.ne.s32.totalorder %s591_s4, %s437_s18  ;;  %p441_p3 = scmp.lt.u32.totalorder %s437_s18, %s591_s4 }
  0x29   :  { %p443_p4 = pnand %p441_p3, %p438_p2 }
  0x2b   :  { %446 = shalt.err (!%p443_p4)
}
  0x2c   :  { %s447_s22 = scalar_lea.vmem %s51_s27, 16  ;;  %s451_s23 = scalar_lea.vmem %s51_s27, 32 }
  0x2d   :  { %p448_p5 = scmp.ne.s32.totalorder %s51_s27, %s447_s22  ;;  %p452_p6 = scmp.lt.s32.totalorder %s51_s27, %s51_s27 }
  0x2e   :  { %p453_p7 = scmp.lt.s32.totalorder %s451_s23, %s447_s22 }
  0x30   :  { %p454_p8 = por %p453_p7, %p452_p6 }
  0x32   :  { %p455_p9 = pnand %p454_p8, %p448_p5 }
  0x34   :  { %458 = shalt.err (!%p455_p9)
}
  0x35   :  { %53 = dma.hbm_to_vmem [thread:$0]  %s591_s4, 16, %s51_s27, [#allocation6]  }
  0x36   :  { %459 = dma.done.wait [#allocation4], 128  }
  0x37   :  { %460 = vsyncadd [#allocation4], 4294967168 }
  0x38   :  { %461 = dma.done.wait [#allocation6], 144  }
  0x39   :  { %462 = vsyncadd [#allocation6], 4294967152  ;;  %v468_v1 = vmov 0.0   ;;  %vm469_vm0 = vmmov 0   ;;  %vm83_vm1 = vcmask 1041408   ;;  %v388_v4 = vld [vmem:[#allocation5] sm:$0xff]  }
  0x3a   :  { %353 = vmatprep.subr.bf16.mxu0 %v468_v1  ;;  %359 = vmatprep.subr.bf16.mxu1 %v468_v1  ;;  %v78_v2 = vld [vmem:[%s590_s3] sm:$0x3]  ;;  %vm79_vm2 = vcmask 31744   ;;  %vm133_vm3 = vcmask 130048   ;;  %v390_v10 = vld [vmem:[%s592_s5 + $0x8] sm:$0xff]   ;;  %vm210_vm4 = vcmask 261120  }
  0x3b   :  { %355 = vmatprep.mubr.msk.bf16.mxu0 %vm469_vm0, %v468_v1  ;;  %361 = vmatprep.mubr.msk.bf16.mxu1 %vm469_vm0, %v468_v1  ;;  %v85_v3 = vsel %vm83_vm1, %v78_v2, 0  ;;  %v74_v5 = vld [vmem:[%s588_s1] sm:$0xff]  ;;  %v334_v15 = vld [vmem:[#allocation7] ss:$0 sm:$0xff]  ;;  %v392_v25 = vld [vmem:[%s594_s7 + $0x8] sm:$0xff]   ;;  %vm323_vm5 = vcmask 7168  }
  0x3c   :  { %v72_v6 = vld [vmem:[#allocation3] sm:$0xff]  ;;  %354 = vmatpush3.bf16.msra.mxu0 %v85_v3  ;;  %v75_v7 = vpack.c.bf16 %v74_v5, %v74_v5  ;;  %360 = vmatpush3.bf16.msra.mxu1 %v388_v4  ;;  %v335_v26 = vld [vmem:[%s593_s6] ss:$0 sm:$0xff] }
  0x3d   :  { %v73_v8 = vpack.c.bf16 %v72_v6, %v72_v6  ;;  %365 = vmatprep.subr.bf16.mxu0 %v468_v1  ;;  %373 = vmatprep.subr.bf16.mxu1 %v468_v1  ;;  %v389_v9 = vld [vmem:[%s592_s5] sm:$0xff]  }
  0x3e   :  { %v391_v11 = vld [vmem:[%s594_s7] sm:$0xff]  }
  0x3f   :  { %356 = vmatmul.mubr.msk.bf16.vlgmr.msra.gmra.mrb[0].mxu0 %vm79_vm2, %v75_v7  ;;  %362 = vmatmul.mubr.msk.bf16.vlgmr.msra.gmra.mrb[0].mxu1 %vm133_vm3, %v73_v8  ;;  %v342_v34 = vld [vmem:[#allocation2] ss:$0 sm:$0xff] }
  0x40   :  { %369 = vmatprep.mubr.msk.bf16.mxu0 %vm469_vm0, %v468_v1  ;;  %377 = vmatprep.mubr.msk.bf16.mxu1 %vm469_vm0, %v468_v1 }
  0x41   :  { %366 = vmatpush3.bf16.msra.mxu0 %v389_v9  ;;  %374 = vmatpush3.bf16.msra.mxu1 %v391_v11 }
  0x42   :  { %367 = vmatprep.subr.bf16.mxu0 %v468_v1  ;;  %375 = vmatprep.subr.bf16.mxu1 %v468_v1 }
  0x45   :  { %368 = vmatpush3.bf16.msra.mxu0 %v390_v10  ;;  %376 = vmatpush3.bf16.msra.mxu1 %v392_v25 }
 0x112   :  { %v121_v12 = vpop.f32.mrb[0].mxu0  ;;  %v171_v14 = vpop.f32.mrb[0].mxu1 }
 0x113   :  { %v357_v13 = vpop.f32.mrb[1].mxu0  ;;  %v172_v16 = vadd.f32 %v171_v14, %v121_v12  ;;  %v363_v18 = vpop.f32.mrb[1].mxu1 }
 0x114   :  { %v124_v17 = vpop.f32.mrb[2].mxu0  ;;  %v174_v20 = vpop.f32.mrb[2].mxu1 }
 0x115   :  { %v358_v19 = vpop.f32.mrb[3].mxu0  ;;  %v184_v21 = vadd.f32 %v334_v15, %v172_v16  ;;  %v364_v22 = vpop.f32.mrb[3].mxu1 }
 0x117   :  { %v185_v23 = vmax.f32 %v184_v21, 0.0 }
 0x119   :  { %v186_v24 = vpack.c.bf16 %v185_v23, %v185_v23 }
 0x11b   :  { %370 = vmatmul.mubr.msk.bf16.vlgmr.msra.gmra.mrb[4].mxu0 %vm210_vm4, %v186_v24 }
 0x1ee   :  { %v248_v27 = vpop.f32.mrb[4].mxu0 }
 0x1ef   :  { %v249_v28 = vadd.f32 %v335_v26, %v248_v27  ;;  %v371_v29 = vpop.f32.mrb[5].mxu0 }
 0x1f0   :  { %v251_v30 = vpop.f32.mrb[6].mxu0 }
 0x1f1   :  { %v254_v31 = vmax.f32 %v249_v28, 0.0  ;;  %v372_v32 = vpop.f32.mrb[7].mxu0 }
 0x1f3   :  { %v255_v33 = vpack.c.bf16 %v254_v31, %v254_v31 }
 0x1f5   :  { %378 = vmatmul.mubr.msk.bf16.vlgmr.msra.gmra.mrb[4].mxu1 %vm210_vm4, %v255_v33 }
 0x2c8   :  { %v309_v35 = vpop.f32.mrb[4].mxu1 }
 0x2c9   :  { %v322_v36 = vadd.f32 %v342_v34, %v309_v35  ;;  %v379_v37 = vpop.f32.mrb[5].mxu1 }
 0x2ca   :  { %v312_v38 = vpop.f32.mrb[6].mxu1 }
 0x2cb   :  { %324 = vst.msk [vmem:[%s596_s9] sm:$0xff] %vm323_vm5, %v322_v36  ;;  %v380_v39 = vpop.f32.mrb[7].mxu1 }
 0x2cc   :  { %329 = vsyncpa [#allocation4], 1 }
 0x2cd   :  { %330 = vsyncpa [#allocation6], 1 }

</bundles_post_ra>
